<compile_context>
chip_gen: v7x
topology: tpu7x:2x2x1
jax: 0.10.0
libtpu: 0.0.40
codegen_flags: <defaults>
</compile_context>

<pallas_src>
import functools

import jax
import jax.numpy as jnp
from jax.experimental import pallas as pl
from jax.experimental.pallas import tpu as pltpu


def sae_kernel(x_ref, wenct_ref, benc_ref, wdec_ref, bdec_ref, wnorm_ref,
               *out_refs, write_feats: bool):
    """Grid = (row_tiles, latent_tiles); the latent axis is the reduction axis.

    Per (row, latent) step:
      * encode one (tm, tl) latent tile, ReLU, optionally store feature_acts,
      * emit the lane-dense weighted-L1 row partial for this latent tile,
      * accumulate the decode contribution into the (tm, d_in) f32 scratch.
    On the last latent step the reconstruction is finalized and the per-block
    row-partial statistics (column sums of x, block-centered SS of x, column
    sums of e^2) are written.  All cross-lane reductions happen in XLA glue.
    """
    if write_feats:
        (sae_out_ref, feats_ref, l1_ref, xsum_ref, ss_ref, e2_ref,
         acc_ref) = out_refs
    else:
        sae_out_ref, l1_ref, xsum_ref, ss_ref, e2_ref, acc_ref = out_refs
        feats_ref = None

    lat = pl.program_id(1)
    n_lat = pl.num_programs(1)

    x = x_ref[...]                                    # (tm, d_in) compute dtype
    b_dec = bdec_ref[...]                             # (1, d_in)  compute dtype

    # --- encode this latent tile (W_enc pre-transposed -> MXU-native dot) ---
    sae_in = x - b_dec
    pre = jnp.dot(sae_in, wenct_ref[...],
                  preferred_element_type=jnp.float32)          # (tm, tl) f32
    pre = pre + benc_ref[...]                                  # b_enc kept f32
    feats = jnp.maximum(pre, 0.0)                              # ReLU (k <= 0)

    if write_feats:
        feats_ref[...] = feats.astype(feats_ref.dtype)

    # --- weighted-L1 row partial (lane-dense (1, 1, tl) store) ---
    l1_ref[...] = jnp.sum(feats * wnorm_ref[...], axis=0, keepdims=True)[None]

    # --- decode partial, accumulated over latent tiles in f32 scratch ---
    part = jnp.dot(feats.astype(wdec_ref.dtype), wdec_ref[...],
                   preferred_element_type=jnp.float32)         # (tm, d_in) f32

    @pl.when(lat == 0)
    def _():
        acc_ref[...] = part

    @pl.when(lat > 0)
    def _():
        acc_ref[...] += part

    # --- finalize this row tile on the last latent step ---
    @pl.when(lat == n_lat - 1)
    def _():
        xf = x.astype(jnp.float32)
        recon = acc_ref[...] + b_dec.astype(jnp.float32)
        sae_out_ref[...] = recon.astype(sae_out_ref.dtype)
        e = recon - xf
        n_rows = xf.shape[0]
        xsum = jnp.sum(xf, axis=0, keepdims=True)              # (1, d_in)
        xc = xf - xsum * (1.0 / n_rows)                        # block-centered x
        xsum_ref[...] = xsum[None]
        ss_ref[...] = jnp.sum(xc * xc, axis=0, keepdims=True)[None]
        e2_ref[...] = jnp.sum(e * e, axis=0, keepdims=True)[None]


def _pick_tile(full: int, requested: int, quantum: int) -> int:
    """Largest divisor of `full` that is <= `requested` and a multiple of
    `quantum`; falls back to `full` (single tile) when no aligned divisor
    exists (e.g. prime sizes)."""
    if full <= requested:
        return full
    for cand in range(min(requested, full), 0, -1):
        if full % cand == 0 and cand % quantum == 0:
            return cand
    return full


def _vmem_capacity_bytes() -> int:
    """Generation-aware VMEM capacity (64 MiB/TC on v7x, 128 MiB v5e/v6e)."""
    try:
        return int(pltpu.get_tpu_info().vmem_capacity_bytes)
    except Exception:
        return 64 << 20        # conservative per-TC fallback (v7x)


@functools.partial(jax.jit, static_argnames=("tm", "tl", "compute_dtype",
                                             "feats_dtype",
                                             "return_feature_acts"))
def sae_forward(x, w_enc, b_enc, w_dec, b_dec, *, tm=256, tl=512,
                compute_dtype=None, feats_dtype=None,
                return_feature_acts=True):
    """Pallas SAE forward.  x: (N, d_in); w_enc, w_dec: (L, d_in).

    tm            row tile (256 fills the 256-wide MXU on v6e/v7x; v5e is
                  already saturated at 128).  Clamped to an aligned divisor
                  of N (no padding needed for ragged batches).
    tl            latent tile used when the weights are streamed.  If both
                  weight matrices fit comfortably in VMEM they stay resident
                  (tl = L: constant block index, fetched from HBM once).
    compute_dtype optional MXU operand dtype (e.g. jnp.bfloat16 for f32
                  inputs: ~4x MXU throughput, half the weight traffic, bf16
                  rounding of operands; accumulation stays f32 and the
                  returned tensors keep x.dtype).
    feats_dtype   storage dtype of feature_acts (default: x.dtype).
    return_feature_acts
                  set False to skip the dense (N, L) feature_acts writeback
                  (the dominant HBM stream when L >> d_in).
    """
    N, d_in = x.shape
    L = w_enc.shape[0]
    out_dtype = jnp.dtype(x.dtype)
    cdtype = jnp.dtype(compute_dtype) if compute_dtype is not None else out_dtype
    fdtype = jnp.dtype(feats_dtype) if feats_dtype is not None else out_dtype

    in_item = cdtype.itemsize
    out_item = out_dtype.itemsize
    f_item = fdtype.itemsize

    # --- tile selection (aligned divisors of N / L) ---
    q_dtypes = [cdtype, out_dtype] + ([fdtype] if return_feature_acts else [])
    tm_q = max(32 // d.itemsize for d in q_dtypes)       # sublane quantum
    tm_eff = _pick_tile(N, tm, tm_q)

    vmem_cap = _vmem_capacity_bytes()
    resident_bytes = 2 * 2 * L * d_in * in_item          # both matrices, 2 bufs
    if resident_bytes <= vmem_cap // 4:
        tl_eff = L                                       # resident fast path
    else:
        tl_eff = _pick_tile(L, tl, 128)                  # stream latent tiles
    G, LT = N // tm_eff, L // tl_eff

    # --- one-time hoisted prep (amortized over the whole grid) ---
    w_norm = jnp.sqrt(jnp.sum(jnp.square(w_dec.astype(jnp.float32)),
                              axis=1))[None, :]          # (1, L) f32
    xk = x.astype(cdtype)
    w_enc_t = w_enc.astype(cdtype).T                     # (d_in, L), no per-step vxpose
    w_dec_k = w_dec.astype(cdtype)
    b_dec_k = b_dec.astype(cdtype)[None, :]              # (1, d_in)
    b_enc_k = b_enc.astype(jnp.float32)[None, :]         # (1, L) f32 (post-MXU add)

    # --- VMEM budget from actual itemsizes; clamp to 90% of capacity ---
    working = (
        2 * tm_eff * d_in * in_item                       # x tile (2 bufs)
        + 2 * 2 * tl_eff * d_in * in_item                 # W_enc^T + W_dec tiles
        + 2 * (2 * tl_eff * 4 + d_in * in_item)           # b_enc, w_norm, b_dec
        + 2 * tm_eff * d_in * out_item                    # sae_out tile
        + (2 * tm_eff * tl_eff * f_item if return_feature_acts else 0)
        + 2 * (tl_eff + 3 * d_in) * 4                     # l1/xsum/ss/e2 partials
        + tm_eff * d_in * 4                               # recon accumulator
        + tm_eff * tl_eff * 4                             # in-flight f32 feats
    )
    vmem_limit = int(min(max(working + (8 << 20), 32 << 20),
                         int(vmem_cap * 0.9)))

    weight_passes = 1 if tl_eff == L else G
    cost = pl.CostEstimate(
        flops=4 * N * d_in * L,
        transcendentals=0,
        bytes_accessed=int(
            N * d_in * in_item
            + weight_passes * 2 * L * d_in * in_item
            + N * d_in * out_item
            + (N * L * f_item if return_feature_acts else 0)
            + G * (L + 3 * d_in) * 4))

    in_specs = [
        pl.BlockSpec((tm_eff, d_in), lambda i, l: (i, 0)),       # x rows
        pl.BlockSpec((d_in, tl_eff), lambda i, l: (0, l)),       # W_enc^T tile
        pl.BlockSpec((1, tl_eff), lambda i, l: (0, l)),          # b_enc tile
        pl.BlockSpec((tl_eff, d_in), lambda i, l: (l, 0)),       # W_dec tile
        pl.BlockSpec((1, d_in), lambda i, l: (0, 0)),            # b_dec
        pl.BlockSpec((1, tl_eff), lambda i, l: (0, l)),          # ||W_dec|| tile
    ]

    out_shapes = [jax.ShapeDtypeStruct((N, d_in), out_dtype)]    # sae_out
    out_specs = [pl.BlockSpec((tm_eff, d_in), lambda i, l: (i, 0))]
    if return_feature_acts:
        out_shapes.append(jax.ShapeDtypeStruct((N, L), fdtype))  # feature_acts
        out_specs.append(pl.BlockSpec((tm_eff, tl_eff), lambda i, l: (i, l)))
    out_shapes += [
        jax.ShapeDtypeStruct((G, 1, L), jnp.float32),     # weighted-L1 partials
        jax.ShapeDtypeStruct((G, 1, d_in), jnp.float32),  # column sums of x
        jax.ShapeDtypeStruct((G, 1, d_in), jnp.float32),  # block-centered SS of x
        jax.ShapeDtypeStruct((G, 1, d_in), jnp.float32),  # column sums of e^2
    ]
    out_specs += [
        pl.BlockSpec((1, 1, tl_eff), lambda i, l: (i, 0, l)),
        pl.BlockSpec((1, 1, d_in), lambda i, l: (i, 0, 0)),
        pl.BlockSpec((1, 1, d_in), lambda i, l: (i, 0, 0)),
        pl.BlockSpec((1, 1, d_in), lambda i, l: (i, 0, 0)),
    ]

    outs = pl.pallas_call(
        functools.partial(sae_kernel, write_feats=return_feature_acts),
        out_shape=tuple(out_shapes),
        grid_spec=pltpu.PrefetchScalarGridSpec(
            num_scalar_prefetch=0,
            grid=(G, LT),
            in_specs=in_specs,
            out_specs=tuple(out_specs),
            scratch_shapes=[pltpu.VMEM((tm_eff, d_in), jnp.float32)]),
        compiler_params=pltpu.CompilerParams(
            dimension_semantics=("parallel", "arbitrary"),
            vmem_limit_bytes=vmem_limit),
        cost_estimate=cost,
    )(xk, w_enc_t, b_enc_k, w_dec_k, b_dec_k, w_norm)

    if return_feature_acts:
        sae_out, feature_acts, l1_parts, xsum_parts, ss_parts, e2_parts = outs
    else:
        sae_out, l1_parts, xsum_parts, ss_parts, e2_parts = outs
        feature_acts = None

    # --- glue: combine per-block row partials (tiny; lane reductions here) ---
    sum_e2 = jnp.sum(e2_parts)
    xsum_b = xsum_parts[:, 0, :]                          # (G, d_in)
    mean_b = xsum_b / tm_eff
    mu = jnp.sum(xsum_b, axis=0, keepdims=True) / N       # (1, d_in)
    # Chan's parallel-variance combination of per-block centered SS (stable).
    total_variance = (jnp.sum(ss_parts)
                      + tm_eff * jnp.sum(jnp.square(mean_b - mu)))

    fvu = sum_e2 / total_variance
    l2_loss = sum_e2 / N
    l1_loss = jnp.sum(l1_parts) / N
    zero = jnp.zeros((), jnp.float32)

    # ForwardOutput-equivalent tuple:
    # (sae_out, feature_acts, topk_acts, topk_indices, fvu, auxk_loss,
    #  multi_topk_fvu, l1_loss, l2_loss)
    return (sae_out, feature_acts, None, None, fvu, zero, zero,
            l1_loss, l2_loss)


def sae_forward_ref(x, w_enc, b_enc, w_dec, b_dec):
    """Pure-JAX reference (mirrors the PyTorch module)."""
    sae_in = x - b_dec
    pre_acts = sae_in @ w_enc.T + b_enc
    feats = jnp.maximum(pre_acts, 0.0)
    sae_out = feats @ w_dec + b_dec
    e = sae_out - x
    tv = jnp.sum((x - x.mean(0)) ** 2)
    fvu = jnp.sum(e ** 2) / tv
    l2 = jnp.sum(e ** 2, axis=-1).mean()
    l1 = jnp.sum(feats * jnp.linalg.norm(w_dec, axis=1), axis=-1).mean()
    return sae_out, feats, fvu, l1, l2


if __name__ == "__main__":
    # Small shapes: batch N=16, d_in=32, expansion_factor=4 -> num_latents=128.
    N, d_in, expansion = 16, 32, 4
    L = d_in * expansion

    key = jax.random.PRNGKey(0)
    kx, kenc, kdec = jax.random.split(key, 3)

    # Deterministic synthetic init (kaiming-uniform-like bounds; zero biases,
    # matching the module's __init__ shapes).
    bound = (6.0 / d_in) ** 0.5
    w_enc = jax.random.uniform(kenc, (L, d_in), jnp.float32,
                               minval=-bound, maxval=bound)
    b_enc = jnp.zeros((L,), jnp.float32)
    w_dec = jax.random.uniform(kdec, (L, d_in), jnp.float32,
                               minval=-bound, maxval=bound)
    b_dec = jnp.zeros((d_in,), jnp.float32)
    x = jax.random.normal(kx, (N, d_in), jnp.float32)

    # --- default (native f32) path: tight check against the reference ---
    out = sae_forward(x, w_enc, b_enc, w_dec, b_dec)
    out = jax.block_until_ready(out)
    sae_out, feats, _, _, fvu, auxk, mtk_fvu, l1, l2 = out

    r_out, r_feats, r_fvu, r_l1, r_l2 = sae_forward_ref(
        x, w_enc, b_enc, w_dec, b_dec)
    assert jnp.allclose(sae_out, r_out, rtol=1e-4, atol=1e-5)
    assert jnp.allclose(feats, r_feats, rtol=1e-4, atol=1e-5)
    assert jnp.allclose(fvu, r_fvu, rtol=1e-4, atol=1e-6)
    assert jnp.allclose(l1, r_l1, rtol=1e-4, atol=1e-5)
    assert jnp.allclose(l2, r_l2, rtol=1e-4, atol=1e-5)
    assert float(auxk) == 0.0 and float(mtk_fvu) == 0.0

    # --- bf16 MXU compute path: loose check against a bf16-rounded reference ---
    def _round(a):
        return a.astype(jnp.bfloat16).astype(jnp.float32)

    out_bf = sae_forward(x, w_enc, b_enc, w_dec, b_dec,
                         compute_dtype=jnp.bfloat16)
    out_bf = jax.block_until_ready(out_bf)
    s_bf, f_bf, _, _, fvu_bf, _, _, l1_bf, l2_bf = out_bf
    b_out, b_feats, b_fvu, b_l1, b_l2 = sae_forward_ref(
        _round(x), _round(w_enc), b_enc, _round(w_dec), _round(b_dec))
    assert jnp.allclose(s_bf, b_out, rtol=5e-2, atol=5e-2)
    assert jnp.allclose(f_bf, b_feats, rtol=5e-2, atol=5e-2)
    assert jnp.allclose(fvu_bf, b_fvu, rtol=5e-2, atol=5e-2)
    assert jnp.allclose(l1_bf, b_l1, rtol=5e-2, atol=5e-2)
    assert jnp.allclose(l2_bf, b_l2, rtol=5e-2, atol=5e-2)

    print("KERNEL_OK")
</pallas_src>

<mosaic_0001>
module attributes {stable_mosaic.version = 11 : i64} {
  func.func @sae_kernel(%arg0: i32, %arg1: i32, %arg2: memref<16x32xf32, #tpu.memory_space<vmem>>, %arg3: memref<32x128xf32, #tpu.memory_space<vmem>>, %arg4: memref<1x128xf32, #tpu.memory_space<vmem>>, %arg5: memref<128x32xf32, #tpu.memory_space<vmem>>, %arg6: memref<1x32xf32, #tpu.memory_space<vmem>>, %arg7: memref<1x128xf32, #tpu.memory_space<vmem>>, %arg8: memref<16x32xf32, #tpu.memory_space<vmem>>, %arg9: memref<16x128xf32, #tpu.memory_space<vmem>>, %arg10: memref<1x1x128xf32, #tpu.memory_space<vmem>>, %arg11: memref<1x1x32xf32, #tpu.memory_space<vmem>>, %arg12: memref<1x1x32xf32, #tpu.memory_space<vmem>>, %arg13: memref<1x1x32xf32, #tpu.memory_space<vmem>>, %arg14: memref<16x32xf32, #tpu.memory_space<vmem>>) attributes {dimension_semantics = [#tpu.dimension_semantics<parallel>, #tpu.dimension_semantics<arbitrary>], iteration_bounds = array<i64: 1, 1>, scalar_prefetch = 0 : i64, scratch_operands = 1 : i64, tpu.core_type = #tpu.core_type<tc>, window_params = [{transform_indices = @transform_0, window_bounds = array<i64: 16, 32>}, {transform_indices = @transform_1, window_bounds = array<i64: 32, 128>}, {transform_indices = @transform_2, window_bounds = array<i64: 1, 128>}, {transform_indices = @transform_3, window_bounds = array<i64: 128, 32>}, {pipeline_mode = #tpu.pipeline_mode<synchronous>, transform_indices = @transform_4, window_bounds = array<i64: 1, 32>}, {transform_indices = @transform_5, window_bounds = array<i64: 1, 128>}, {transform_indices = @transform_6, window_bounds = array<i64: 16, 32>}, {transform_indices = @transform_7, window_bounds = array<i64: 16, 128>}, {transform_indices = @transform_8, window_bounds = array<i64: 1, 1, 128>}, {transform_indices = @transform_9, window_bounds = array<i64: 1, 1, 32>}, {transform_indices = @transform_10, window_bounds = array<i64: 1, 1, 32>}, {transform_indices = @transform_11, window_bounds = array<i64: 1, 1, 32>}]} {
    %c0 = arith.constant 0 : index
    %c0_0 = arith.constant 0 : index
    %0 = vector.load %arg2[%c0, %c0_0] : memref<16x32xf32, #tpu.memory_space<vmem>>, vector<16x32xf32>
    %c0_1 = arith.constant 0 : index
    %c0_2 = arith.constant 0 : index
    %1 = vector.load %arg6[%c0_1, %c0_2] : memref<1x32xf32, #tpu.memory_space<vmem>>, vector<1x32xf32>
    %2 = vector.broadcast %1 : vector<1x32xf32> to vector<16x32xf32>
    %3 = arith.subf %0, %2 : vector<16x32xf32>
    %c0_3 = arith.constant 0 : index
    %c0_4 = arith.constant 0 : index
    %4 = vector.load %arg3[%c0_3, %c0_4] : memref<32x128xf32, #tpu.memory_space<vmem>>, vector<32x128xf32>
    %cst = arith.constant dense<0.000000e+00> : vector<16x128xf32>
    %5 = tpu.matmul %3, %4, %cst {dimension_numbers = #tpu.dot_dimension_numbers<[1], [0], [0], [1], [0, 0, 1, 1], [], []>} : vector<16x32xf32>, vector<32x128xf32>, vector<16x128xf32> -> vector<16x128xf32>
    %c0_5 = arith.constant 0 : index
    %c0_6 = arith.constant 0 : index
    %6 = vector.load %arg4[%c0_5, %c0_6] : memref<1x128xf32, #tpu.memory_space<vmem>>, vector<1x128xf32>
    %7 = vector.broadcast %6 : vector<1x128xf32> to vector<16x128xf32>
    %8 = arith.addf %5, %7 : vector<16x128xf32>
    %cst_7 = arith.constant 0.000000e+00 : f32
    %9 = vector.broadcast %cst_7 : f32 to vector<16x128xf32>
    %10 = arith.maximumf %8, %9 : vector<16x128xf32>
    %c0_8 = arith.constant 0 : index
    %c0_9 = arith.constant 0 : index
    %11 = vector.load %arg9[%c0_8, %c0_9] : memref<16x128xf32, #tpu.memory_space<vmem>>, vector<16x128xf32>
    tpu.vector_store %arg9[%c0_8, %c0_9], %10 {strides = array<i32>} : memref<16x128xf32, #tpu.memory_space<vmem>>, vector<16x128xf32>,
    %c0_10 = arith.constant 0 : index
    %c0_11 = arith.constant 0 : index
    %12 = vector.load %arg7[%c0_10, %c0_11] : memref<1x128xf32, #tpu.memory_space<vmem>>, vector<1x128xf32>
    %13 = vector.broadcast %12 : vector<1x128xf32> to vector<16x128xf32>
    %14 = arith.mulf %10, %13 : vector<16x128xf32>
    %cst_12 = arith.constant dense<0.000000e+00> : vector<128xf32>
    %15 = vector.multi_reduction <add>, %14, %cst_12 [0] : vector<16x128xf32> to vector<128xf32>
    %16 = vector.shape_cast %15 : vector<128xf32> to vector<1x128xf32>
    %17 = vector.shape_cast %16 : vector<1x128xf32> to vector<1x1x128xf32>
    %c0_13 = arith.constant 0 : index
    %c0_14 = arith.constant 0 : index
    %c0_15 = arith.constant 0 : index
    %18 = vector.load %arg10[%c0_13, %c0_14, %c0_15] : memref<1x1x128xf32, #tpu.memory_space<vmem>>, vector<1x1x128xf32>
    tpu.vector_store %arg10[%c0_13, %c0_14, %c0_15], %17 {strides = array<i32>} : memref<1x1x128xf32, #tpu.memory_space<vmem>>, vector<1x1x128xf32>,
    %c0_16 = arith.constant 0 : index
    %c0_17 = arith.constant 0 : index
    %19 = vector.load %arg5[%c0_16, %c0_17] : memref<128x32xf32, #tpu.memory_space<vmem>>, vector<128x32xf32>
    %cst_18 = arith.constant dense<0.000000e+00> : vector<16x32xf32>
    %20 = tpu.matmul %10, %19, %cst_18 {dimension_numbers = #tpu.dot_dimension_numbers<[1], [0], [0], [1], [0, 0, 1, 1], [], []>} : vector<16x128xf32>, vector<128x32xf32>, vector<16x32xf32> -> vector<16x32xf32>
    %c0_i32 = arith.constant 0 : i32
    %21 = arith.cmpi eq, %arg1, %c0_i32 : i32
    %22 = arith.extui %21 : i1 to i32
    %c0_i32_19 = arith.constant 0 : i32
    %23 = arith.cmpi ne, %22, %c0_i32_19 : i32
    scf.if %23 {
      %c0_24 = arith.constant 0 : index
      %c0_25 = arith.constant 0 : index
      %30 = vector.load %arg14[%c0_24, %c0_25] : memref<16x32xf32, #tpu.memory_space<vmem>>, vector<16x32xf32>
      tpu.vector_store %arg14[%c0_24, %c0_25], %20 {strides = array<i32>} : memref<16x32xf32, #tpu.memory_space<vmem>>, vector<16x32xf32>,
    } else {
    }
    %c0_i32_20 = arith.constant 0 : i32
    %24 = arith.cmpi sgt, %arg1, %c0_i32_20 : i32
    %25 = arith.extui %24 : i1 to i32
    %c0_i32_21 = arith.constant 0 : i32
    %26 = arith.cmpi ne, %25, %c0_i32_21 : i32
    scf.if %26 {
      %c0_24 = arith.constant 0 : index
      %c0_25 = arith.constant 0 : index
      %30 = vector.load %arg14[%c0_24, %c0_25] : memref<16x32xf32, #tpu.memory_space<vmem>>, vector<16x32xf32>
      %31 = arith.addf %30, %20 : vector<16x32xf32>
      %c0_26 = arith.constant 0 : index
      %c0_27 = arith.constant 0 : index
      %32 = vector.load %arg14[%c0_26, %c0_27] : memref<16x32xf32, #tpu.memory_space<vmem>>, vector<16x32xf32>
      tpu.vector_store %arg14[%c0_26, %c0_27], %31 {strides = array<i32>} : memref<16x32xf32, #tpu.memory_space<vmem>>, vector<16x32xf32>,
    } else {
    }
    %c0_i32_22 = arith.constant 0 : i32
    %27 = arith.cmpi eq, %arg1, %c0_i32_22 : i32
    %28 = arith.extui %27 : i1 to i32
    %c0_i32_23 = arith.constant 0 : i32
    %29 = arith.cmpi ne, %28, %c0_i32_23 : i32
    scf.if %29 {
      %c0_24 = arith.constant 0 : index
      %c0_25 = arith.constant 0 : index
      %30 = vector.load %arg14[%c0_24, %c0_25] : memref<16x32xf32, #tpu.memory_space<vmem>>, vector<16x32xf32>
      %31 = vector.broadcast %1 : vector<1x32xf32> to vector<16x32xf32>
      %32 = arith.addf %30, %31 : vector<16x32xf32>
      %c0_26 = arith.constant 0 : index
      %c0_27 = arith.constant 0 : index
      %33 = vector.load %arg8[%c0_26, %c0_27] : memref<16x32xf32, #tpu.memory_space<vmem>>, vector<16x32xf32>
      tpu.vector_store %arg8[%c0_26, %c0_27], %32 {strides = array<i32>} : memref<16x32xf32, #tpu.memory_space<vmem>>, vector<16x32xf32>,
      %34 = arith.subf %32, %0 : vector<16x32xf32>
      %cst_28 = arith.constant dense<0.000000e+00> : vector<32xf32>
      %35 = vector.multi_reduction <add>, %0, %cst_28 [0] : vector<16x32xf32> to vector<32xf32>
      %36 = vector.shape_cast %35 : vector<32xf32> to vector<1x32xf32>
      %cst_29 = arith.constant 6.250000e-02 : f32
      %37 = vector.broadcast %cst_29 : f32 to vector<1x32xf32>
      %38 = arith.mulf %36, %37 : vector<1x32xf32>
      %39 = vector.broadcast %38 : vector<1x32xf32> to vector<16x32xf32>
      %40 = arith.subf %0, %39 : vector<16x32xf32>
      %41 = vector.shape_cast %36 : vector<1x32xf32> to vector<1x1x32xf32>
      %c0_30 = arith.constant 0 : index
      %c0_31 = arith.constant 0 : index
      %c0_32 = arith.constant 0 : index
      %42 = vector.load %arg11[%c0_30, %c0_31, %c0_32] : memref<1x1x32xf32, #tpu.memory_space<vmem>>, vector<1x1x32xf32>
      tpu.vector_store %arg11[%c0_30, %c0_31, %c0_32], %41 {strides = array<i32>} : memref<1x1x32xf32, #tpu.memory_space<vmem>>, vector<1x1x32xf32>,
      %43 = arith.mulf %40, %40 : vector<16x32xf32>
      %cst_33 = arith.constant dense<0.000000e+00> : vector<32xf32>
      %44 = vector.multi_reduction <add>, %43, %cst_33 [0] : vector<16x32xf32> to vector<32xf32>
      %45 = vector.shape_cast %44 : vector<32xf32> to vector<1x32xf32>
      %46 = vector.shape_cast %45 : vector<1x32xf32> to vector<1x1x32xf32>
      %c0_34 = arith.constant 0 : index
      %c0_35 = arith.constant 0 : index
      %c0_36 = arith.constant 0 : index
      %47 = vector.load %arg12[%c0_34, %c0_35, %c0_36] : memref<1x1x32xf32, #tpu.memory_space<vmem>>, vector<1x1x32xf32>
      tpu.vector_store %arg12[%c0_34, %c0_35, %c0_36], %46 {strides = array<i32>} : memref<1x1x32xf32, #tpu.memory_space<vmem>>, vector<1x1x32xf32>,
      %48 = arith.mulf %34, %34 : vector<16x32xf32>
      %cst_37 = arith.constant dense<0.000000e+00> : vector<32xf32>
      %49 = vector.multi_reduction <add>, %48, %cst_37 [0] : vector<16x32xf32> to vector<32xf32>
      %50 = vector.shape_cast %49 : vector<32xf32> to vector<1x32xf32>
      %51 = vector.shape_cast %50 : vector<1x32xf32> to vector<1x1x32xf32>
      %c0_38 = arith.constant 0 : index
      %c0_39 = arith.constant 0 : index
      %c0_40 = arith.constant 0 : index
      %52 = vector.load %arg13[%c0_38, %c0_39, %c0_40] : memref<1x1x32xf32, #tpu.memory_space<vmem>>, vector<1x1x32xf32>
      tpu.vector_store %arg13[%c0_38, %c0_39, %c0_40], %51 {strides = array<i32>} : memref<1x1x32xf32, #tpu.memory_space<vmem>>, vector<1x1x32xf32>,
    } else {
    }
    return
  }
  func.func @transform_0(%arg0: i32, %arg1: i32) -> (i32, i32) {
    %c0_i32 = arith.constant 0 : i32
    %c0_i32_0 = arith.constant 0 : i32
    return %arg0, %c0_i32 : i32, i32
  }
  func.func @transform_1(%arg0: i32, %arg1: i32) -> (i32, i32) {
    %c0_i32 = arith.constant 0 : i32
    %c0_i32_0 = arith.constant 0 : i32
    return %c0_i32, %arg1 : i32, i32
  }
  func.func @transform_2(%arg0: i32, %arg1: i32) -> (i32, i32) {
    %c0_i32 = arith.constant 0 : i32
    %c0_i32_0 = arith.constant 0 : i32
    return %c0_i32, %arg1 : i32, i32
  }
  func.func @transform_3(%arg0: i32, %arg1: i32) -> (i32, i32) {
    %c0_i32 = arith.constant 0 : i32
    %c0_i32_0 = arith.constant 0 : i32
    return %arg1, %c0_i32 : i32, i32
  }
  func.func @transform_4(%arg0: i32, %arg1: i32) -> (i32, i32) {
    %c0_i32 = arith.constant 0 : i32
    %c0_i32_0 = arith.constant 0 : i32
    %c0_i32_1 = arith.constant 0 : i32
    return %c0_i32, %c0_i32_0 : i32, i32
  }
  func.func @transform_5(%arg0: i32, %arg1: i32) -> (i32, i32) {
    %c0_i32 = arith.constant 0 : i32
    %c0_i32_0 = arith.constant 0 : i32
    return %c0_i32, %arg1 : i32, i32
  }
  func.func @transform_6(%arg0: i32, %arg1: i32) -> (i32, i32) {
    %c0_i32 = arith.constant 0 : i32
    %c0_i32_0 = arith.constant 0 : i32
    return %arg0, %c0_i32 : i32, i32
  }
  func.func @transform_7(%arg0: i32, %arg1: i32) -> (i32, i32) {
    %c0_i32 = arith.constant 0 : i32
    return %arg0, %arg1 : i32, i32
  }
  func.func @transform_8(%arg0: i32, %arg1: i32) -> (i32, i32, i32) {
    %c0_i32 = arith.constant 0 : i32
    %c0_i32_0 = arith.constant 0 : i32
    return %arg0, %c0_i32, %arg1 : i32, i32, i32
  }
  func.func @transform_9(%arg0: i32, %arg1: i32) -> (i32, i32, i32) {
    %c0_i32 = arith.constant 0 : i32
    %c0_i32_0 = arith.constant 0 : i32
    %c0_i32_1 = arith.constant 0 : i32
    return %arg0, %c0_i32, %c0_i32_0 : i32, i32, i32
  }
  func.func @transform_10(%arg0: i32, %arg1: i32) -> (i32, i32, i32) {
    %c0_i32 = arith.constant 0 : i32
    %c0_i32_0 = arith.constant 0 : i32
    %c0_i32_1 = arith.constant 0 : i32
    return %arg0, %c0_i32, %c0_i32_0 : i32, i32, i32
  }
  func.func @transform_11(%arg0: i32, %arg1: i32) -> (i32, i32, i32) {
    %c0_i32 = arith.constant 0 : i32
    %c0_i32_0 = arith.constant 0 : i32
    %c0_i32_1 = arith.constant 0 : i32
    return %arg0, %c0_i32, %c0_i32_0 : i32, i32, i32
  }
}

</mosaic_0001>

<bundles_post_ra>
// kernel: sae_forward.1
= control target key start
LH: loop header
LB: loop body
LE: loop exit
PB: predicated region body
PF: predicated region fallthrough
CT: control target
= control target key end

     0   :  { %17 = vsyncpa [#allocation4], 0  ;;  %vm53_vm0 = vcmask 261120   ;;  %s741_s0 = inlined_call_operand.vmem [shape: f32[16,32], index: 0, kind: input, shape index: {}]   ;;  %s742_s1 = inlined_call_operand.vmem [shape: f32[32,128], index: 1, kind: input, shape index: {}]   ;;  %s743_s2 = inlined_call_operand.vmem [shape: f32[1,128], index: 2, kind: input, shape index: {}]   ;;  %s744_s3 = inlined_call_operand.vmem [shape: f32[128,32], index: 3, kind: input, shape index: {}]   ;;  %s745_s4 = inlined_call_operand.vmem [shape: f32[1,32], index: 4, kind: input, shape index: {}]   ;;  %s746_s5 = inlined_call_operand.vmem [shape: f32[1,128], index: 5, kind: input, shape index: {}]   ;;  %s747_s6 = inlined_call_operand.hbm [shape: f32[16,32], index: 6, kind: output, shape index: {0}]   ;;  %s748_s7 = inlined_call_operand.hbm [shape: f32[16,128], index: 7, kind: output, shape index: {1}]   ;;  %s749_s8 = inlined_call_operand.vmem [shape: f32[1,1,128], index: 8, kind: output, shape index: {2}]   ;;  %s750_s9 = inlined_call_operand.vmem [shape: f32[1,1,32], index: 9, kind: output, shape index: {3}]   ;;  %s751_s10 = inlined_call_operand.vmem [shape: f32[1,1,32], index: 10, kind: output, shape index: {4}]   ;;  %s752_s11 = inlined_call_operand.vmem [shape: f32[1,1,32], index: 11, kind: output, shape index: {5}]  }
   0x1   :  { %v42_v0 = vld [vmem:[%s742_s1] sm:$0xff]  ;;  %v43_v1 = vld [vmem:[%s742_s1 + $0x8] sm:$0xff]  ;;  %v44_v2 = vld [vmem:[%s742_s1 + $0x10] sm:$0xff] }
   0x2   :  { %v435_v3 = vpack.c.bf16 %v43_v1, %v42_v0  ;;  %v45_v4 = vld [vmem:[%s742_s1 + $0x18] sm:$0xff]  ;;  %v606_v5 = vld [vmem:[%s741_s0] sm:$0xff]  ;;  %v611_v6 = vld [vmem:[%s741_s0 + $0x8] sm:$0xff] }
   0x3   :  { %v439_v7 = vpack.c.bf16 %v45_v4, %v44_v2  ;;  %v616_v8 = vld [vmem:[%s745_s4] ss:$0 sm:$0xff]  ;;  %v274_v9 = vsel %vm53_vm0, %v606_v5, 0.0  ;;  %v275_v10 = vsel %vm53_vm0, %v611_v6, 0.0  ;;  %v157_v12 = vld [vmem:[%s744_s3 + $0x8] sm:$0xff]  ;;  %v158_v16 = vld [vmem:[%s744_s3 + $0x10] sm:$0xff] }
   0x4   :  { %v156_v11 = vld [vmem:[%s744_s3] sm:$0xff]  ;;  %436 = vmatprep.subr.bf16.mxu0 %v435_v3  ;;  %v40_v13 = vsub.f32 %v606_v5, %v616_v8  ;;  %v276_v14 = vadd.f32 %v275_v10, %v274_v9  ;;  %v159_v17 = vld [vmem:[%s744_s3 + $0x18] sm:$0xff]  ;;  %v161_v21 = vld [vmem:[%s744_s3 + $0x28] sm:$0xff]  ;;  %v41_v23 = vsub.f32 %v611_v6, %v616_v8 }
   0x5   :  { %v443_v15 = vpack.c.bf16 %v157_v12, %v156_v11  ;;  %438 = vmatpush3.bf16.msra.mxu0 %v435_v3  ;;  %v447_v18 = vpack.c.bf16 %v159_v17, %v158_v16  ;;  %v160_v20 = vld [vmem:[%s744_s3 + $0x20] sm:$0xff] }
   0x6   :  { %440 = vmatprep.subr.bf16.mxu0 %v439_v7  ;;  %397 = vmatprep.mubr.msk.f32.mxu0 %vm53_vm0, %v40_v13  ;;  %v277_v19 = vrot.slane %v276_v14, 4 }
   0x7   :  { %444 = vmatprep.subr.bf16.mxu1 %v443_v15 }
   0x8   :  { %v278_v22 = vadd.f32 %v277_v19, %v276_v14  ;;  %446 = vmatpush3.bf16.msra.mxu1 %v443_v15 }
   0x9   :  { %18 = vsyncpa [#allocation6], 0  ;;  %442 = vmatpush3.bf16.msra.mxu0 %v439_v7  ;;  %448 = vmatprep.subr.bf16.mxu1 %v447_v18  ;;  %v451_v24 = vpack.c.bf16 %v161_v21, %v160_v20  ;;  %v162_v26 = vld [vmem:[%s744_s3 + $0x30] sm:$0xff]  ;;  %v163_v27 = vld [vmem:[%s744_s3 + $0x38] sm:$0xff]  ;;  %vm286_vm1 = vcmask 253952  }
   0xa   :  { %v279_v25 = vrot.slane %v278_v22, 2  ;;  %v455_v29 = vpack.c.bf16 %v163_v27, %v162_v26  ;;  %v164_v31 = vld [vmem:[%s744_s3 + $0x40] sm:$0xff]  ;;  %v165_v32 = vld [vmem:[%s744_s3 + $0x48] sm:$0xff]  ;;  %v166_v36 = vld [vmem:[%s744_s3 + $0x50] sm:$0xff] }
   0xb   :  { %v459_v34 = vpack.c.bf16 %v165_v32, %v164_v31  ;;  %v167_v37 = vld [vmem:[%s744_s3 + $0x58] sm:$0xff]  ;;  %v168_v43 = vld [vmem:[%s744_s3 + $0x60] sm:$0xff]  ;;  %v169_v44 = vld [vmem:[%s744_s3 + $0x68] sm:$0xff] }
   0xc   :  { %v280_v28 = vadd.f32 %v279_v25, %v278_v22  ;;  %398 = vmatmul.mubr.msk.f32.vlgmr.msra.gmra.mrb[0].mxu0 %vm53_vm0, %v41_v23  ;;  %450 = vmatpush3.bf16.msra.mxu1 %v447_v18  ;;  %v463_v40 = vpack.c.bf16 %v167_v37, %v166_v36  ;;  %v467_v48 = vpack.c.bf16 %v169_v44, %v168_v43  ;;  %v170_v55 = vld [vmem:[%s744_s3 + $0x70] sm:$0xff]  ;;  %v171_v56 = vld [vmem:[%s744_s3 + $0x78] sm:$0xff]  ;;  %v361_v58 = vld [vmem:[%s743_s2] ss:$0 sm:$0xff] }
   0xd   :  { %452 = vmatprep.subr.bf16.mxu1 %v451_v24  ;;  %v471_v57 = vpack.c.bf16 %v171_v56, %v170_v55  ;;  %v364_v62 = vld [vmem:[%s746_s5] ss:$0 sm:$0xff]  ;;  %s527_s5 = smov [#allocation5]  }
   0xe   :  { %v281_v30 = vrot.slane %v280_v28, 1  ;;  %s329_s25 = sshll.u32 %s527_s5, 4  ;;  %s330_s25 = int_to_ptr.vmem [resolvable:$true] %s329_s25 }
   0xf   :  { %s479_s26 = scalar_lea.vmem %s330_s25, 256  ;;  %p484_p1 = scmp.lt.s32.totalorder %s330_s25, %s330_s25 }
  0x10   :  { %v282_v33 = vadd.f32 %v281_v30, %v280_v28  ;;  %454 = vmatpush3.bf16.msra.mxu1 %v451_v24  ;;  %p480_p0 = scmp.ne.s32.totalorder %s330_s25, %s479_s26  ;;  %p485_p2 = scmp.lt.s32.totalorder %s479_s26, %s479_s26 }
  0x11   :  { %456 = vmatprep.subr.bf16.mxu1 %v455_v29 }
  0x12   :  { %v283_v35 = vmul.f32 0.0625, %v282_v33  ;;  %287 = vst.msk [vmem:[%s750_s9] sm:$0x1] %vm286_vm1, %v282_v33  ;;  %p486_p3 = por %p485_p2, %p484_p1 }
  0x14   :  { %v284_v38 = vsub.f32 %v606_v5, %v283_v35  ;;  %v285_v39 = vsub.f32 %v611_v6, %v283_v35  ;;  %458 = vmatpush3.bf16.msra.mxu1 %v455_v29  ;;  %p487_p4 = pnand %p486_p3, %p480_p0 }
  0x15   :  { %460 = vmatprep.subr.bf16.mxu1 %v459_v34 }
  0x16   :  { %v288_v41 = vmul.f32 %v284_v38, %v284_v38  ;;  %v289_v42 = vmul.f32 %v285_v39, %v285_v39 }
  0x18   :  { %v290_v45 = vsel %vm53_vm0, %v288_v41, 0.0  ;;  %v291_v46 = vsel %vm53_vm0, %v289_v42, 0.0  ;;  %462 = vmatpush3.bf16.msra.mxu1 %v459_v34 }
  0x19   :  { %v292_v47 = vadd.f32 %v291_v46, %v290_v45  ;;  %464 = vmatprep.subr.bf16.mxu1 %v463_v40 }
  0x1b   :  { %v293_v49 = vrot.slane %v292_v47, 4 }
  0x1c   :  { %466 = vmatpush3.bf16.msra.mxu1 %v463_v40 }
  0x1d   :  { %v294_v50 = vadd.f32 %v293_v49, %v292_v47  ;;  %468 = vmatprep.subr.bf16.mxu1 %v467_v48 }
  0x1f   :  { %v295_v51 = vrot.slane %v294_v50, 2 }
  0x20   :  { %470 = vmatpush3.bf16.msra.mxu1 %v467_v48 }
  0x21   :  { %v296_v52 = vadd.f32 %v295_v51, %v294_v50  ;;  %472 = vmatprep.subr.bf16.mxu1 %v471_v57 }
  0x23   :  { %v297_v53 = vrot.slane %v296_v52, 1 }
  0x24   :  { %474 = vmatpush3.bf16.msra.mxu1 %v471_v57 }
  0x25   :  { %v298_v54 = vadd.f32 %v297_v53, %v296_v52 }
  0x27   :  { %299 = vst.msk [vmem:[%s751_s10] sm:$0x1] %vm286_vm1, %v298_v54 }
  0xdf   :  { %v399_v59 = vpop.f32.mrb[0].mxu0 }
  0xe0   :  { %v132_v60 = vadd.f32 %v399_v59, %v361_v58  ;;  %v126_v61 = vpop.f32.mrb[1].mxu0 }
  0xe1   :  { %v127_v63 = vadd.f32 %v361_v58, %v126_v61 }
  0xe2   :  { %v136_v0 = vmax.f32 %v132_v60, 0.0 }
  0xe3   :  { %v135_v1 = vmax.f32 %v127_v63, 0.0 }
  0xe4   :  { %138 = vst [vmem:[#allocation5 + $0x8] sm:$0xff] %v136_v0  ;;  %v147_v2 = vmul.f32 %v364_v62, %v136_v0 }
  0xe5   :  { %137 = vst [vmem:[#allocation5] sm:$0xff] %v135_v1  ;;  %v146_v3 = vmul.f32 %v364_v62, %v135_v1  ;;  %432 = vmatprep.mubr.f32.mxu1 %v135_v1 }
  0xe6   :  { %433 = vmatmul.mubr.f32.vlgmr.msra.gmra.mrb[0].mxu1 %v136_v0 }
  0xe7   :  { %v148_v4 = vadd.f32 %v147_v2, %v146_v3 }
  0xe9   :  { %v149_v7 = vrot.slane %v148_v4, 4 }
  0xeb   :  { %v150_v9 = vadd.f32 %v149_v7, %v148_v4 }
  0xed   :  { %v151_v10 = vrot.slane %v150_v9, 2 }
  0xef   :  { %v152_v11 = vadd.f32 %v151_v10, %v150_v9 }
  0xf1   :  { %v153_v12 = vrot.slane %v152_v11, 1 }
  0xf3   :  { %v154_v13 = vadd.f32 %v153_v12, %v152_v11 }
  0xf5   :  { %155 = vst [vmem:[%s749_s8] sm:$0x1] %v154_v13 }
  0xf6   :  { %490 = shalt.err (!%p487_p4)
}
  0xf7   :  { %s491_s29 = scalar_lea.hbm %s748_s7, 256 }
  0xf8   :  { %p492_p5 = scmp.ne.s32.totalorder %s748_s7, %s491_s29  ;;  %p495_p6 = scmp.lt.u32.totalorder %s491_s29, %s748_s7 }
  0xfa   :  { %p497_p7 = pnand %p495_p6, %p492_p5 }
  0xfc   :  { %500 = shalt.err (!%p497_p7)
}
  0xfd   :  { %s528_s13 = smov 128   ;;  %s529_s0 = smov 8  }
  0xfe   :  { %335 = dma.vmem_to_hbm [thread:$0]  %s330_s25, 256, %s748_s7, [#allocation6], %s528_s13, %s528_s13, %s529_s0  }
  0xff   :  { %s530_s9 = smov [#allocation3]  }
 0x100   :  { %s317_s15 = sshll.u32 %s530_s9, 4  ;;  %s318_s15 = int_to_ptr.vmem [resolvable:$true] %s317_s15 }
 0x101   :  { %s501_s7 = scalar_lea.vmem %s318_s15, 256  ;;  %p506_p9 = scmp.lt.s32.totalorder %s318_s15, %s318_s15 }
 0x102   :  { %p502_p8 = scmp.ne.s32.totalorder %s318_s15, %s501_s7  ;;  %p507_p10 = scmp.lt.s32.totalorder %s501_s7, %s501_s7 }
 0x104   :  { %p508_p11 = por %p507_p10, %p506_p9 }
 0x106   :  { %p509_p12 = pnand %p508_p11, %p502_p8 }
 0x1b9   :  { %v434_v14 = vpop.f32.mrb[0].mxu1 }
 0x1ba   :  { %252 = vst.msk [vmem:[#allocation2 + $0x8] sm:$0xff] %vm53_vm0, %v434_v14  ;;  %v238_v15 = vpop.f32.mrb[1].mxu1 }
 0x1bb   :  { %251 = vst.msk [vmem:[#allocation2] sm:$0xff] %vm53_vm0, %v238_v15 }
 0x1c1   :  { %v267_v16 = vld [vmem:[#allocation2 + $0x8] sm:$0xff] }
 0x1c2   :  { %v266_v17 = vld [vmem:[#allocation2] sm:$0xff]  ;;  %v269_v18 = vadd.f32 %v616_v8, %v267_v16 }
 0x1c3   :  { %v268_v19 = vadd.f32 %v616_v8, %v266_v17 }
 0x1c4   :  { %271 = vst.msk [vmem:[#allocation3 + $0x8] sm:$0xff] %vm53_vm0, %v269_v18  ;;  %v273_v20 = vsub.f32 %v269_v18, %v611_v6 }
 0x1c5   :  { %270 = vst.msk [vmem:[#allocation3] sm:$0xff] %vm53_vm0, %v268_v19  ;;  %v272_v21 = vsub.f32 %v268_v19, %v606_v5 }
 0x1c6   :  { %v301_v22 = vmul.f32 %v273_v20, %v273_v20 }
 0x1c7   :  { %512 = shalt.err (!%p509_p12)
}
 0x1c8   :  { %s513_s18 = scalar_lea.hbm %s747_s6, 256 }
 0x1c9   :  { %p514_p13 = scmp.ne.s32.totalorder %s747_s6, %s513_s18  ;;  %p517_p0 = scmp.lt.u32.totalorder %s513_s18, %s747_s6 }
 0x1cb   :  { %p519_p1 = pnand %p517_p0, %p514_p13 }
 0x1cd   :  { %522 = shalt.err (!%p519_p1)
}
 0x1ce   :  { %323 = dma.vmem_to_hbm [thread:$0]  %s318_s15, 256, %s747_s6, [#allocation4], %s528_s13, %s528_s13, %s529_s0   ;;  %v300_v5 = vmul.f32 %v272_v21, %v272_v21  ;;  %v303_v6 = vsel %vm53_vm0, %v301_v22, 0.0 }
 0x1d0   :  { %v302_v8 = vsel %vm53_vm0, %v300_v5, 0.0 }
 0x1d1   :  { %v304_v23 = vadd.f32 %v303_v6, %v302_v8 }
 0x1d3   :  { %v305_v24 = vrot.slane %v304_v23, 4 }
 0x1d5   :  { %v306_v25 = vadd.f32 %v305_v24, %v304_v23 }
 0x1d7   :  { %v307_v26 = vrot.slane %v306_v25, 2 }
 0x1d9   :  { %v308_v27 = vadd.f32 %v307_v26, %v306_v25 }
 0x1db   :  { %v309_v28 = vrot.slane %v308_v27, 1 }
 0x1dd   :  { %v310_v29 = vadd.f32 %v309_v28, %v308_v27 }
 0x1df   :  { %311 = vst.msk [vmem:[%s752_s11] sm:$0x1] %vm286_vm1, %v310_v29 }
 0x1e0   :  { %523 = dma.done.wait [#allocation4], 256  }
 0x1e1   :  { %524 = vsyncadd [#allocation4], 4294967040 }
 0x1e2   :  { %525 = dma.done.wait [#allocation6], 256  }
 0x1e3   :  { %526 = vsyncadd [#allocation6], 4294967040 }
 0x1e4   :  { %358 = vsyncpa [#allocation4], 1 }
 0x1e5   :  { %359 = vsyncpa [#allocation6], 1 }

</bundles_post_ra>
